<compile_context>
chip_gen: v7x
topology: tpu7x:2x2x1
jax: 0.10.0
libtpu: 0.0.40
codegen_flags: <defaults>
</compile_context>

<pallas_src>
import jax
import jax.numpy as jnp
from jax.experimental import pallas as pl
from jax.experimental.pallas import tpu as pltpu

_LANE = 128
_SUBLANE = 16  # multiple of 8 (f32) and 16 (packed bf16): safe for both layouts


def _round_up(x, m):
    return ((x + m - 1) // m) * m


def _mlp_kernel(x_ref, w1_ref, b1_ref, w2_ref, b2_ref, out_ref):
    # One batch tile: (Bt, obs) @ (obs, Hp) -> f32 bias+ReLU -> @ (Hp, A).
    cdt = w1_ref.dtype
    x = x_ref[...].astype(cdt)  # in-kernel operand cast (free under DMA)
    h = jnp.dot(x, w1_ref[...], preferred_element_type=jnp.float32)
    h = jnp.maximum(h + b1_ref[...], 0.0)                       # f32 epilogue
    y = jnp.dot(h.astype(cdt), w2_ref[...],
                preferred_element_type=jnp.float32)
    out_ref[...] = (y + b2_ref[...]).astype(out_ref.dtype)


def prepare_params(w1, b1, w2, b2, *, compute_dtype=None):
    """Pad/cast parameters once (hoisted out of the per-call forward path).

    w1: (obs, H); b1: (H,); w2: (H, A); b2: (A,).
    Hidden dim is zero-padded to a multiple of 128 lanes so the intermediate
    matmul/bias/ReLU are full-vreg. The action dim A is left un-padded.
    compute_dtype: MXU operand dtype (bf16 is fine on v5e/v6e/v7x; the MXU
    accumulates in f32 and the bias/ReLU epilogue is always f32).
    """
    obs, H = w1.shape
    A = w2.shape[1]
    cdt = compute_dtype or w1.dtype
    Hp = _round_up(H, _LANE)
    w1_p = jnp.pad(w1, ((0, 0), (0, Hp - H))).astype(cdt)
    b1_p = jnp.pad(jnp.reshape(b1, (1, H)), ((0, 0), (0, Hp - H))).astype(jnp.float32)
    w2_p = jnp.pad(w2, ((0, Hp - H), (0, 0))).astype(cdt)
    b2_p = jnp.reshape(b2, (1, A)).astype(jnp.float32)
    return w1_p, b1_p, w2_p, b2_p


def _choose_tile(B, block_b):
    Bp = _round_up(B, _SUBLANE)
    if Bp <= block_b:
        if Bp >= 512:
            # Split a single big tile in two so both v7x TensorCores get work.
            bt = _round_up((Bp + 1) // 2, _SUBLANE)
        else:
            bt = Bp  # small-batch fast path: single grid step
    else:
        bt = _round_up(min(block_b, Bp), _SUBLANE)
    Bp = _round_up(B, bt)
    return bt, Bp


def net_forward(x, params, *, block_b=1024, out_dtype=None):
    """relu(x @ w1 + b1) @ w2 + b2 via a batch-tiled fused Pallas kernel.

    x: (B, obs) in its storage dtype; params from prepare_params().
    """
    w1_p, b1_p, w2_p, b2_p = params
    B, obs = x.shape
    Hp = w1_p.shape[1]
    A = w2_p.shape[1]
    out_dtype = out_dtype or x.dtype

    bt, Bp = _choose_tile(B, block_b)
    if Bp != B:
        x = jnp.pad(x, ((0, Bp - B), (0, 0)))

    cost = pl.CostEstimate(
        flops=2 * Bp * (obs * Hp + Hp * A),
        transcendentals=0,
        bytes_accessed=(x.size * x.dtype.itemsize
                        + w1_p.size * w1_p.dtype.itemsize
                        + w2_p.size * w2_p.dtype.itemsize
                        + (b1_p.size + b2_p.size) * 4
                        + Bp * A * jnp.dtype(out_dtype).itemsize),
    )

    out_p = pl.pallas_call(
        _mlp_kernel,
        out_shape=jax.ShapeDtypeStruct((Bp, A), out_dtype),
        grid=(Bp // bt,),
        in_specs=[
            # Activation tile marches over the batch axis (double-buffered DMA).
            pl.BlockSpec((bt, obs), lambda i: (i, 0)),
            # Weights / biases: constant block index -> fetched once, VMEM-resident.
            pl.BlockSpec((obs, Hp), lambda i: (0, 0)),
            pl.BlockSpec((1, Hp), lambda i: (0, 0)),
            pl.BlockSpec((Hp, A), lambda i: (0, 0)),
            pl.BlockSpec((1, A), lambda i: (0, 0)),
        ],
        # Last dim A equals the full array dim -> legal un-padded output block.
        out_specs=pl.BlockSpec((bt, A), lambda i: (i, 0)),
        compiler_params=pltpu.CompilerParams(
            # Batch tiles are independent -> shard across v7x's 2 TensorCores.
            dimension_semantics=("parallel",),
        ),
        cost_estimate=cost,
    )(x, w1_p, b1_p, w2_p, b2_p)
    return out_p if Bp == B else out_p[:B]


def init_params(key, obs_size, hidden_size, n_actions, dtype=jnp.float32):
    """Deterministic init mimicking nn.Linear's uniform(-1/sqrt(fan_in), ...)."""
    k1, k2, k3, k4 = jax.random.split(key, 4)
    bound1 = obs_size ** -0.5
    bound2 = hidden_size ** -0.5
    # Stored as (in, out) so the kernel does x @ W directly (torch stores (out, in)).
    w1 = jax.random.uniform(k1, (obs_size, hidden_size), dtype, -bound1, bound1)
    b1 = jax.random.uniform(k2, (hidden_size,), dtype, -bound1, bound1)
    w2 = jax.random.uniform(k3, (hidden_size, n_actions), dtype, -bound2, bound2)
    b2 = jax.random.uniform(k4, (n_actions,), dtype, -bound2, bound2)
    return w1, b1, w2, b2


if __name__ == "__main__":
    obs_size, hidden_size, n_actions = 16, 32, 4
    batch = 8

    key = jax.random.PRNGKey(0)
    kx, kp = jax.random.split(key)
    x = jax.random.normal(kx, (batch, obs_size), dtype=jnp.float32)
    w1, b1, w2, b2 = init_params(kp, obs_size, hidden_size, n_actions)

    # Pure-JAX reference of the same semantics.
    ref = jnp.maximum(x @ w1 + b1[None, :], 0.0) @ w2 + b2[None, :]

    # f32 operand path (strict check).
    params_f32 = prepare_params(w1, b1, w2, b2)
    out_f32 = jax.block_until_ready(net_forward(x, params_f32))
    assert out_f32.shape == (batch, n_actions)
    assert jnp.allclose(out_f32, ref, atol=1e-5, rtol=1e-5)

    # bf16 operand / f32 accumulate fast path (valid on v5e/v6e/v7x).
    params_bf16 = prepare_params(w1, b1, w2, b2, compute_dtype=jnp.bfloat16)
    out_bf16 = jax.block_until_ready(net_forward(x, params_bf16))
    assert out_bf16.shape == (batch, n_actions)
    assert jnp.allclose(out_bf16, ref, atol=5e-2, rtol=5e-2)

    # Multi-tile grid path (batch padding + grid > 1), still tiny shapes.
    x_big = jax.random.normal(kx, (40, obs_size), dtype=jnp.float32)
    ref_big = jnp.maximum(x_big @ w1 + b1[None, :], 0.0) @ w2 + b2[None, :]
    out_big = jax.block_until_ready(net_forward(x_big, params_f32, block_b=16))
    assert out_big.shape == (40, n_actions)
    assert jnp.allclose(out_big, ref_big, atol=1e-5, rtol=1e-5)

    print("KERNEL_OK")
</pallas_src>

<mosaic_0001>
module attributes {stable_mosaic.version = 11 : i64} {
  func.func @_mlp_kernel(%arg0: i32, %arg1: memref<16x16xf32, #tpu.memory_space<vmem>>, %arg2: memref<16x128xf32, #tpu.memory_space<vmem>>, %arg3: memref<1x128xf32, #tpu.memory_space<vmem>>, %arg4: memref<128x4xf32, #tpu.memory_space<vmem>>, %arg5: memref<1x4xf32, #tpu.memory_space<vmem>>, %arg6: memref<16x4xf32, #tpu.memory_space<vmem>>) attributes {dimension_semantics = [#tpu.dimension_semantics<parallel>], iteration_bounds = array<i64: 1>, scalar_prefetch = 0 : i64, scratch_operands = 0 : i64, tpu.core_type = #tpu.core_type<tc>, window_params = [{transform_indices = @transform_0, window_bounds = array<i64: 16, 16>}, {pipeline_mode = #tpu.pipeline_mode<synchronous>, transform_indices = @transform_1, window_bounds = array<i64: 16, 128>}, {pipeline_mode = #tpu.pipeline_mode<synchronous>, transform_indices = @transform_2, window_bounds = array<i64: 1, 128>}, {pipeline_mode = #tpu.pipeline_mode<synchronous>, transform_indices = @transform_3, window_bounds = array<i64: 128, 4>}, {pipeline_mode = #tpu.pipeline_mode<synchronous>, transform_indices = @transform_4, window_bounds = array<i64: 1, 4>}, {transform_indices = @transform_5, window_bounds = array<i64: 16, 4>}]} {
    %c0 = arith.constant 0 : index
    %c0_0 = arith.constant 0 : index
    %0 = vector.load %arg1[%c0, %c0_0] : memref<16x16xf32, #tpu.memory_space<vmem>>, vector<16x16xf32>
    %c0_1 = arith.constant 0 : index
    %c0_2 = arith.constant 0 : index
    %1 = vector.load %arg2[%c0_1, %c0_2] : memref<16x128xf32, #tpu.memory_space<vmem>>, vector<16x128xf32>
    %cst = arith.constant dense<0.000000e+00> : vector<16x128xf32>
    %2 = tpu.matmul %0, %1, %cst {dimension_numbers = #tpu.dot_dimension_numbers<[1], [0], [0], [1], [0, 0, 1, 1], [], []>} : vector<16x16xf32>, vector<16x128xf32>, vector<16x128xf32> -> vector<16x128xf32>
    %c0_3 = arith.constant 0 : index
    %c0_4 = arith.constant 0 : index
    %3 = vector.load %arg3[%c0_3, %c0_4] : memref<1x128xf32, #tpu.memory_space<vmem>>, vector<1x128xf32>
    %4 = vector.broadcast %3 : vector<1x128xf32> to vector<16x128xf32>
    %5 = arith.addf %2, %4 : vector<16x128xf32>
    %cst_5 = arith.constant 0.000000e+00 : f32
    %6 = vector.broadcast %cst_5 : f32 to vector<16x128xf32>
    %7 = arith.maximumf %5, %6 : vector<16x128xf32>
    %c0_6 = arith.constant 0 : index
    %c0_7 = arith.constant 0 : index
    %8 = vector.load %arg4[%c0_6, %c0_7] : memref<128x4xf32, #tpu.memory_space<vmem>>, vector<128x4xf32>
    %cst_8 = arith.constant dense<0.000000e+00> : vector<16x4xf32>
    %9 = tpu.matmul %7, %8, %cst_8 {dimension_numbers = #tpu.dot_dimension_numbers<[1], [0], [0], [1], [0, 0, 1, 1], [], []>} : vector<16x128xf32>, vector<128x4xf32>, vector<16x4xf32> -> vector<16x4xf32>
    %c0_9 = arith.constant 0 : index
    %c0_10 = arith.constant 0 : index
    %10 = vector.load %arg5[%c0_9, %c0_10] : memref<1x4xf32, #tpu.memory_space<vmem>>, vector<1x4xf32>
    %11 = vector.broadcast %10 : vector<1x4xf32> to vector<16x4xf32>
    %12 = arith.addf %9, %11 : vector<16x4xf32>
    %c0_11 = arith.constant 0 : index
    %c0_12 = arith.constant 0 : index
    %13 = vector.load %arg6[%c0_11, %c0_12] : memref<16x4xf32, #tpu.memory_space<vmem>>, vector<16x4xf32>
    tpu.vector_store %arg6[%c0_11, %c0_12], %12 {strides = array<i32>} : memref<16x4xf32, #tpu.memory_space<vmem>>, vector<16x4xf32>,
    return
  }
  func.func @transform_0(%arg0: i32) -> (i32, i32) {
    %c0_i32 = arith.constant 0 : i32
    %c0_i32_0 = arith.constant 0 : i32
    return %arg0, %c0_i32 : i32, i32
  }
  func.func @transform_1(%arg0: i32) -> (i32, i32) {
    %c0_i32 = arith.constant 0 : i32
    %c0_i32_0 = arith.constant 0 : i32
    %c0_i32_1 = arith.constant 0 : i32
    return %c0_i32, %c0_i32_0 : i32, i32
  }
  func.func @transform_2(%arg0: i32) -> (i32, i32) {
    %c0_i32 = arith.constant 0 : i32
    %c0_i32_0 = arith.constant 0 : i32
    %c0_i32_1 = arith.constant 0 : i32
    return %c0_i32, %c0_i32_0 : i32, i32
  }
  func.func @transform_3(%arg0: i32) -> (i32, i32) {
    %c0_i32 = arith.constant 0 : i32
    %c0_i32_0 = arith.constant 0 : i32
    %c0_i32_1 = arith.constant 0 : i32
    return %c0_i32, %c0_i32_0 : i32, i32
  }
  func.func @transform_4(%arg0: i32) -> (i32, i32) {
    %c0_i32 = arith.constant 0 : i32
    %c0_i32_0 = arith.constant 0 : i32
    %c0_i32_1 = arith.constant 0 : i32
    return %c0_i32, %c0_i32_0 : i32, i32
  }
  func.func @transform_5(%arg0: i32) -> (i32, i32) {
    %c0_i32 = arith.constant 0 : i32
    %c0_i32_0 = arith.constant 0 : i32
    return %arg0, %c0_i32 : i32, i32
  }
}

</mosaic_0001>

<bundles_post_ra>
// kernel: tpu_custom_call.1
= control target key start
LH: loop header
LB: loop body
LE: loop exit
PB: predicated region body
PF: predicated region fallthrough
CT: control target
= control target key end

     0   :  { %vm31_vm0 = vcmask 130048   ;;  %vm213_vm1 = vcmask 31744   ;;  %s428_s1 = inlined_call_operand.vmem [shape: f32[16,128], index: 1, kind: input, shape index: {}]   ;;  %s429_s0 = inlined_call_operand.vmem [shape: f32[16,16], index: 0, kind: input, shape index: {}]   ;;  %s430_s3 = inlined_call_operand.vmem [shape: f32[128,4], index: 3, kind: input, shape index: {}]   ;;  %s431_s2 = inlined_call_operand.vmem [shape: f32[1,128], index: 2, kind: input, shape index: {}]   ;;  %s432_s4 = inlined_call_operand.vmem [shape: f32[1,4], index: 4, kind: input, shape index: {}]   ;;  %s433_s5 = inlined_call_operand.vmem [shape: f32[16,4], index: 5, kind: output, shape index: {}]  }
   0x1   :  { %v22_v0 = vld [vmem:[%s428_s1] sm:$0xff]  ;;  %v23_v1 = vld [vmem:[%s428_s1 + $0x8] sm:$0xff]  ;;  %v117_v7 = vld [vmem:[%s430_s3 + $0x10] sm:$0xff] }
   0x2   :  { %v20_v2 = vld [vmem:[%s429_s0] sm:$0xff]  ;;  %v288_v3 = vpack.c.bf16 %v23_v1, %v22_v0  ;;  %v116_v5 = vld [vmem:[%s430_s3 + $0x8] sm:$0xff]  ;;  %v118_v8 = vld [vmem:[%s430_s3 + $0x18] sm:$0xff] }
   0x3   :  { %250 = vmatprep.mubr.msk.f32.mxu0 %vm31_vm0, %v20_v2  ;;  %v115_v4 = vld [vmem:[%s430_s3] sm:$0xff]  ;;  %v296_v9 = vpack.c.bf16 %v118_v8, %v117_v7  ;;  %v120_v11 = vld [vmem:[%s430_s3 + $0x28] sm:$0xff]  ;;  %v121_v14 = vld [vmem:[%s430_s3 + $0x30] sm:$0xff] }
   0x4   :  { %v292_v6 = vpack.c.bf16 %v116_v5, %v115_v4  ;;  %289 = vmatprep.subr.bf16.mxu0 %v288_v3  ;;  %v119_v10 = vld [vmem:[%s430_s3 + $0x20] sm:$0xff]  ;;  %v21_v12 = vld [vmem:[%s429_s0 + $0x8] sm:$0xff]  ;;  %v122_v15 = vld [vmem:[%s430_s3 + $0x38] sm:$0xff] }
   0x5   :  { %291 = vmatpush3.bf16.msra.mxu0 %v288_v3  ;;  %v300_v13 = vpack.c.bf16 %v120_v11, %v119_v10  ;;  %v304_v16 = vpack.c.bf16 %v122_v15, %v121_v14  ;;  %v123_v17 = vld [vmem:[%s430_s3 + $0x40] sm:$0xff]  ;;  %v124_v18 = vld [vmem:[%s430_s3 + $0x48] sm:$0xff]  ;;  %v125_v20 = vld [vmem:[%s430_s3 + $0x50] sm:$0xff] }
   0x6   :  { %293 = vmatprep.subr.bf16.mxu1 %v292_v6  ;;  %v308_v19 = vpack.c.bf16 %v124_v18, %v123_v17  ;;  %v126_v21 = vld [vmem:[%s430_s3 + $0x58] sm:$0xff]  ;;  %v127_v23 = vld [vmem:[%s430_s3 + $0x60] sm:$0xff]  ;;  %v128_v24 = vld [vmem:[%s430_s3 + $0x68] sm:$0xff] }
   0x7   :  { %295 = vmatpush3.bf16.msra.mxu1 %v292_v6  ;;  %v312_v22 = vpack.c.bf16 %v126_v21, %v125_v20  ;;  %v316_v25 = vpack.c.bf16 %v128_v24, %v127_v23  ;;  %v129_v26 = vld [vmem:[%s430_s3 + $0x70] sm:$0xff]  ;;  %v130_v27 = vld [vmem:[%s430_s3 + $0x78] sm:$0xff]  ;;  %v220_v29 = vld [vmem:[%s431_s2] ss:$0 sm:$0xff] }
   0x8   :  { %297 = vmatprep.subr.bf16.mxu1 %v296_v9  ;;  %251 = vmatmul.mubr.msk.f32.vlgmr.msra.gmra.mrb[0].mxu0 %vm31_vm0, %v21_v12  ;;  %v320_v28 = vpack.c.bf16 %v130_v27, %v129_v26  ;;  %v223_v36 = vld [vmem:[%s432_s4] ss:$0 sm:$0xff] }
   0xb   :  { %299 = vmatpush3.bf16.msra.mxu1 %v296_v9 }
   0xc   :  { %301 = vmatprep.subr.bf16.mxu1 %v300_v13 }
   0xf   :  { %303 = vmatpush3.bf16.msra.mxu1 %v300_v13 }
  0x10   :  { %305 = vmatprep.subr.bf16.mxu1 %v304_v16 }
  0x13   :  { %307 = vmatpush3.bf16.msra.mxu1 %v304_v16 }
  0x14   :  { %309 = vmatprep.subr.bf16.mxu1 %v308_v19 }
  0x17   :  { %311 = vmatpush3.bf16.msra.mxu1 %v308_v19 }
  0x18   :  { %313 = vmatprep.subr.bf16.mxu1 %v312_v22 }
  0x1b   :  { %315 = vmatpush3.bf16.msra.mxu1 %v312_v22 }
  0x1c   :  { %317 = vmatprep.subr.bf16.mxu1 %v316_v25 }
  0x1f   :  { %319 = vmatpush3.bf16.msra.mxu1 %v316_v25 }
  0x20   :  { %321 = vmatprep.subr.bf16.mxu1 %v320_v28 }
  0x23   :  { %323 = vmatpush3.bf16.msra.mxu1 %v320_v28 }
  0xdb   :  { %v252_v30 = vpop.f32.mrb[0].mxu0 }
  0xdc   :  { %v110_v31 = vadd.f32 %v252_v30, %v220_v29  ;;  %v104_v32 = vpop.f32.mrb[1].mxu0 }
  0xdd   :  { %v105_v33 = vadd.f32 %v220_v29, %v104_v32 }
  0xde   :  { %v114_v35 = vmax.f32 %v110_v31, 0.0 }
  0xdf   :  { %v113_v34 = vmax.f32 %v105_v33, 0.0 }
  0xe1   :  { %285 = vmatprep.mubr.f32.mxu1 %v113_v34 }
  0xe2   :  { %286 = vmatmul.mubr.f32.vlgmr.msra.gmra.mrb[0].mxu1 %v114_v35 }
 0x1b5   :  { %v287_v37 = vpop.f32.mrb[0].mxu1 }
 0x1b6   :  { %v210_v38 = vadd.f32 %v287_v37, %v223_v36  ;;  %v204_v39 = vpop.f32.mrb[1].mxu1 }
 0x1b7   :  { %v205_v40 = vadd.f32 %v223_v36, %v204_v39 }
 0x1b8   :  { %215 = vst.msk [vmem:[%s433_s5 + $0x8] sm:$0xff] %vm213_vm1, %v210_v38 }
 0x1b9   :  { %214 = vst.msk [vmem:[%s433_s5] sm:$0xff] %vm213_vm1, %v205_v40 }

</bundles_post_ra>
